<compile_context>
chip_gen: v7x
topology: tpu7x:2x2x1
jax: 0.10.0
libtpu: 0.0.40
codegen_flags: <defaults>
</compile_context>

<pallas_src>
import jax
import jax.numpy as jnp
from jax.experimental import pallas as pl
from jax.experimental.pallas import tpu as pltpu


def _head_kernel(x_ref, w1_ref, b1_ref, w2_ref, b2_ref, o_ref):
    # dropout(x) -> identity (eval mode)
    x = x_ref[...]                                                  # (TM, H)
    # dense: x @ W1 (MXU, f32 accumulation); bias add + tanh stay in f32
    h = jnp.dot(x, w1_ref[...], preferred_element_type=jnp.float32)
    h = h + b1_ref[...]                                             # (TM, H) + (1, H)
    h = jnp.tanh(h)                                                 # EUP, f32
    # dropout(h) -> identity (eval mode)
    # out_proj: h @ W2 + b2  (W2/b2 lane-padded to a multiple of 128)
    y = jnp.dot(h.astype(w2_ref.dtype), w2_ref[...],
                preferred_element_type=jnp.float32)
    y = y + b2_ref[...]                                             # (TM, Lp) + (1, Lp)
    o_ref[...] = y.astype(o_ref.dtype)


def _round_up(x, m):
    return (x + m - 1) // m * m


def regression_head(features, w_dense, b_dense, w_out, b_out,
                    *, block_m=512, matmul_dtype=None):
    """features: (batch, seq, hidden). Returns (batch, seq, num_labels).

    matmul_dtype: optional dtype (e.g. jnp.bfloat16) for the matmul operands;
    accumulation / bias / tanh remain float32, output dtype = features.dtype.
    """
    B, S, H = features.shape
    L = w_out.shape[1]
    M = B * S
    out_dtype = features.dtype

    # --- row tiling over M; small M collapses to a single full-size tile ---
    m8 = _round_up(M, 8)
    if m8 <= block_m:
        tm, m_pad = m8, m8
    else:
        tm = block_m
        m_pad = _round_up(M, tm)

    # --- lane-dense output: pad num_labels to a multiple of 128 ---
    l_pad = _round_up(L, 128)

    x2d = features.reshape(M, H)
    if m_pad != M:
        x2d = jnp.pad(x2d, ((0, m_pad - M), (0, 0)))

    w1 = w_dense
    w2 = w_out
    b2 = b_out
    if l_pad != L:
        w2 = jnp.pad(w2, ((0, 0), (0, l_pad - L)))
        b2 = jnp.pad(b2, (0, l_pad - L))

    if matmul_dtype is not None:
        x2d = x2d.astype(matmul_dtype)
        w1 = w1.astype(matmul_dtype)
        w2 = w2.astype(matmul_dtype)

    b1 = b_dense.astype(jnp.float32).reshape(1, H)
    b2 = b2.astype(jnp.float32).reshape(1, l_pad)

    grid = (m_pad // tm,)

    out2d = pl.pallas_call(
        _head_kernel,
        out_shape=jax.ShapeDtypeStruct((m_pad, l_pad), out_dtype),
        grid_spec=pl.GridSpec(
            grid=grid,
            in_specs=[
                pl.BlockSpec((tm, H), lambda i: (i, 0)),      # x tile (pipelined)
                pl.BlockSpec((H, H), lambda i: (0, 0)),       # W_dense (resident)
                pl.BlockSpec((1, H), lambda i: (0, 0)),       # b_dense (resident)
                pl.BlockSpec((H, l_pad), lambda i: (0, 0)),   # W_out   (resident)
                pl.BlockSpec((1, l_pad), lambda i: (0, 0)),   # b_out   (resident)
            ],
            out_specs=pl.BlockSpec((tm, l_pad), lambda i: (i, 0)),
        ),
        compiler_params=pltpu.CompilerParams(
            # independent row tiles -> shard across TensorCores on v7x megacore
            dimension_semantics=("parallel",)),
    )(x2d, w1, b1, w2, b2)

    return out2d[:M, :L].reshape(B, S, L)


def _reference(features, w_dense, b_dense, w_out, b_out):
    h = jnp.tanh(features @ w_dense + b_dense)
    return h @ w_out + b_out


if __name__ == "__main__":
    # config: hidden_size=32, num_labels=4; input batch=2, seq=8
    # (NOTE: at this toy size a Pallas dispatch is overhead-dominated; in a real
    #  model this head should use realistic H / batch*seq or be fused upstream.)
    B, S, H, L = 2, 8, 32, 4
    key = jax.random.PRNGKey(0)
    k_x, k_w1, k_b1, k_w2, k_b2 = jax.random.split(key, 5)

    features = jax.random.normal(k_x, (B, S, H), dtype=jnp.float32)
    # Linear weights stored as (in, out) for x @ W
    w_dense = jax.random.normal(k_w1, (H, H), dtype=jnp.float32) * (1.0 / jnp.sqrt(H))
    b_dense = jax.random.normal(k_b1, (H,), dtype=jnp.float32) * 0.01
    w_out = jax.random.normal(k_w2, (H, L), dtype=jnp.float32) * (1.0 / jnp.sqrt(H))
    b_out = jax.random.normal(k_b2, (L,), dtype=jnp.float32) * 0.01

    ref = _reference(features, w_dense, b_dense, w_out, b_out)

    # f32 path: exact-ish match against the reference
    out = regression_head(features, w_dense, b_dense, w_out, b_out)
    out = jax.block_until_ready(out)
    assert out.shape == (B, S, L), out.shape
    assert jnp.allclose(out, ref, atol=1e-5, rtol=1e-5), "f32 mismatch vs reference"

    # bf16-matmul path (MXU-friendly on v6e/v7x); looser tolerance for rounding
    out_bf16 = regression_head(features, w_dense, b_dense, w_out, b_out,
                               matmul_dtype=jnp.bfloat16)
    out_bf16 = jax.block_until_ready(out_bf16)
    assert out_bf16.shape == (B, S, L), out_bf16.shape
    assert jnp.allclose(out_bf16, ref, atol=1e-1, rtol=1e-1), "bf16 mismatch vs reference"

    print("KERNEL_OK")
</pallas_src>

<mosaic_0001>
module attributes {stable_mosaic.version = 11 : i64} {
  func.func @_head_kernel(%arg0: i32, %arg1: memref<16x32xf32, #tpu.memory_space<vmem>>, %arg2: memref<32x32xf32, #tpu.memory_space<vmem>>, %arg3: memref<1x32xf32, #tpu.memory_space<vmem>>, %arg4: memref<32x128xf32, #tpu.memory_space<vmem>>, %arg5: memref<1x128xf32, #tpu.memory_space<vmem>>, %arg6: memref<16x128xf32, #tpu.memory_space<vmem>>) attributes {dimension_semantics = [#tpu.dimension_semantics<parallel>], iteration_bounds = array<i64: 1>, scalar_prefetch = 0 : i64, scratch_operands = 0 : i64, tpu.core_type = #tpu.core_type<tc>, window_params = [{transform_indices = @transform_0, window_bounds = array<i64: 16, 32>}, {pipeline_mode = #tpu.pipeline_mode<synchronous>, transform_indices = @transform_1, window_bounds = array<i64: 32, 32>}, {pipeline_mode = #tpu.pipeline_mode<synchronous>, transform_indices = @transform_2, window_bounds = array<i64: 1, 32>}, {pipeline_mode = #tpu.pipeline_mode<synchronous>, transform_indices = @transform_3, window_bounds = array<i64: 32, 128>}, {pipeline_mode = #tpu.pipeline_mode<synchronous>, transform_indices = @transform_4, window_bounds = array<i64: 1, 128>}, {transform_indices = @transform_5, window_bounds = array<i64: 16, 128>}]} {
    %c0 = arith.constant 0 : index
    %c0_0 = arith.constant 0 : index
    %0 = vector.load %arg1[%c0, %c0_0] : memref<16x32xf32, #tpu.memory_space<vmem>>, vector<16x32xf32>
    %c0_1 = arith.constant 0 : index
    %c0_2 = arith.constant 0 : index
    %1 = vector.load %arg2[%c0_1, %c0_2] : memref<32x32xf32, #tpu.memory_space<vmem>>, vector<32x32xf32>
    %cst = arith.constant dense<0.000000e+00> : vector<16x32xf32>
    %2 = tpu.matmul %0, %1, %cst {dimension_numbers = #tpu.dot_dimension_numbers<[1], [0], [0], [1], [0, 0, 1, 1], [], []>} : vector<16x32xf32>, vector<32x32xf32>, vector<16x32xf32> -> vector<16x32xf32>
    %c0_3 = arith.constant 0 : index
    %c0_4 = arith.constant 0 : index
    %3 = vector.load %arg3[%c0_3, %c0_4] : memref<1x32xf32, #tpu.memory_space<vmem>>, vector<1x32xf32>
    %4 = vector.broadcast %3 : vector<1x32xf32> to vector<16x32xf32>
    %5 = arith.addf %2, %4 : vector<16x32xf32>
    %6 = math.tanh %5 : vector<16x32xf32>
    %c0_5 = arith.constant 0 : index
    %c0_6 = arith.constant 0 : index
    %7 = vector.load %arg4[%c0_5, %c0_6] : memref<32x128xf32, #tpu.memory_space<vmem>>, vector<32x128xf32>
    %cst_7 = arith.constant dense<0.000000e+00> : vector<16x128xf32>
    %8 = tpu.matmul %6, %7, %cst_7 {dimension_numbers = #tpu.dot_dimension_numbers<[1], [0], [0], [1], [0, 0, 1, 1], [], []>} : vector<16x32xf32>, vector<32x128xf32>, vector<16x128xf32> -> vector<16x128xf32>
    %c0_8 = arith.constant 0 : index
    %c0_9 = arith.constant 0 : index
    %9 = vector.load %arg5[%c0_8, %c0_9] : memref<1x128xf32, #tpu.memory_space<vmem>>, vector<1x128xf32>
    %10 = vector.broadcast %9 : vector<1x128xf32> to vector<16x128xf32>
    %11 = arith.addf %8, %10 : vector<16x128xf32>
    %c0_10 = arith.constant 0 : index
    %c0_11 = arith.constant 0 : index
    %12 = vector.load %arg6[%c0_10, %c0_11] : memref<16x128xf32, #tpu.memory_space<vmem>>, vector<16x128xf32>
    tpu.vector_store %arg6[%c0_10, %c0_11], %11 {strides = array<i32>} : memref<16x128xf32, #tpu.memory_space<vmem>>, vector<16x128xf32>,
    return
  }
  func.func @transform_0(%arg0: i32) -> (i32, i32) {
    %c0_i32 = arith.constant 0 : i32
    %c0_i32_0 = arith.constant 0 : i32
    return %arg0, %c0_i32 : i32, i32
  }
  func.func @transform_1(%arg0: i32) -> (i32, i32) {
    %c0_i32 = arith.constant 0 : i32
    %c0_i32_0 = arith.constant 0 : i32
    %c0_i32_1 = arith.constant 0 : i32
    return %c0_i32, %c0_i32_0 : i32, i32
  }
  func.func @transform_2(%arg0: i32) -> (i32, i32) {
    %c0_i32 = arith.constant 0 : i32
    %c0_i32_0 = arith.constant 0 : i32
    %c0_i32_1 = arith.constant 0 : i32
    return %c0_i32, %c0_i32_0 : i32, i32
  }
  func.func @transform_3(%arg0: i32) -> (i32, i32) {
    %c0_i32 = arith.constant 0 : i32
    %c0_i32_0 = arith.constant 0 : i32
    %c0_i32_1 = arith.constant 0 : i32
    return %c0_i32, %c0_i32_0 : i32, i32
  }
  func.func @transform_4(%arg0: i32) -> (i32, i32) {
    %c0_i32 = arith.constant 0 : i32
    %c0_i32_0 = arith.constant 0 : i32
    %c0_i32_1 = arith.constant 0 : i32
    return %c0_i32, %c0_i32_0 : i32, i32
  }
  func.func @transform_5(%arg0: i32) -> (i32, i32) {
    %c0_i32 = arith.constant 0 : i32
    %c0_i32_0 = arith.constant 0 : i32
    return %arg0, %c0_i32 : i32, i32
  }
}

</mosaic_0001>

<bundles_post_ra>
// kernel: tpu_custom_call.1
= control target key start
LH: loop header
LB: loop body
LE: loop exit
PB: predicated region body
PF: predicated region fallthrough
CT: control target
= control target key end

     0   :  { %10 = vsyncpa [#allocation3], 0  ;;  %s544_s0 = inlined_call_operand.hbm [shape: f32[16,32], index: 0, kind: input, shape index: {}]   ;;  %s545_s1 = inlined_call_operand.hbm [shape: f32[32,32], index: 1, kind: input, shape index: {}]   ;;  %s546_s2 = inlined_call_operand.vmem [shape: f32[1,32], index: 2, kind: input, shape index: {}]   ;;  %s547_s3 = inlined_call_operand.hbm [shape: f32[32,128], index: 3, kind: input, shape index: {}]   ;;  %s548_s4 = inlined_call_operand.vmem [shape: f32[1,128], index: 4, kind: input, shape index: {}]   ;;  %s549_s5 = inlined_call_operand.hbm [shape: f32[16,128], index: 5, kind: output, shape index: {}]  }
   0x1   :  { %11 = vsyncpa [#allocation6], 0 }
   0x2   :  { %12 = vsyncpa [#allocation4], 0  ;;  %s431_s18 = smov [#allocation5]   ;;  %s432_s20 = smov [#allocation2]  }
   0x3   :  { %s30_s19 = sshll.u32 %s431_s18, 4  ;;  %s18_s21 = sshll.u32 %s432_s20, 4  ;;  %s31_s19 = int_to_ptr.vmem [resolvable:$true] %s30_s19  ;;  %s467_s21 = int_to_ptr.vmem [resolvable:$true] %s18_s21 }
   0x4   :  { %s337_s24 = scalar_lea.hbm %s545_s1, 512 }
   0x5   :  { %p338_p0 = scmp.ne.s32.totalorder %s545_s1, %s337_s24  ;;  %p341_p1 = scmp.lt.u32.totalorder %s337_s24, %s545_s1 }
   0x7   :  { %p343_p2 = pnand %p341_p1, %p338_p0 }
   0x9   :  { %346 = shalt.err (!%p343_p2)
}
   0xa   :  { %s347_s29 = scalar_lea.vmem %s31_s19, 512  ;;  %p352_p4 = scmp.lt.s32.totalorder %s31_s19, %s31_s19 }
   0xb   :  { %p348_p3 = scmp.ne.s32.totalorder %s31_s19, %s347_s29  ;;  %p353_p5 = scmp.lt.s32.totalorder %s347_s29, %s347_s29 }
   0xd   :  { %p354_p6 = por %p353_p5, %p352_p4 }
   0xf   :  { %p355_p7 = pnand %p354_p6, %p348_p3 }
  0x11   :  { %358 = shalt.err (!%p355_p7)
}
  0x12   :  { %s433_s30 = smov 128   ;;  %s434_s6 = smov 8  }
  0x13   :  { %36 = dma.hbm_to_vmem [thread:$0]  %s545_s1, 512, %s31_s19, [#allocation6], %s433_s30, %s433_s30, %s434_s6  }
  0x14   :  { %s359_s11 = scalar_lea.hbm %s544_s0, 256 }
  0x15   :  { %p360_p8 = scmp.ne.s32.totalorder %s544_s0, %s359_s11  ;;  %p363_p9 = scmp.lt.u32.totalorder %s359_s11, %s544_s0 }
  0x17   :  { %p365_p10 = pnand %p363_p9, %p360_p8 }
  0x19   :  { %368 = shalt.err (!%p365_p10)
}
  0x1a   :  { %s369_s16 = scalar_lea.vmem %s467_s21, 256  ;;  %p374_p12 = scmp.lt.s32.totalorder %s467_s21, %s467_s21 }
  0x1b   :  { %p370_p11 = scmp.ne.s32.totalorder %s467_s21, %s369_s16  ;;  %p375_p13 = scmp.lt.s32.totalorder %s369_s16, %s369_s16 }
  0x1d   :  { %p376_p0 = por %p375_p13, %p374_p12 }
  0x1f   :  { %p377_p1 = pnand %p376_p0, %p370_p11 }
  0x21   :  { %380 = shalt.err (!%p377_p1)
}
  0x22   :  { %24 = dma.hbm_to_vmem [thread:$0]  %s544_s0, 256, %s467_s21, [#allocation3], %s433_s30, %s433_s30, %s434_s6  }
  0x23   :  { %s435_s18 = smov [#allocation7]   ;;  %s381_s23 = scalar_lea.hbm %s547_s3, 512 }
  0x24   :  { %s44_s19 = sshll.u32 %s435_s18, 4  ;;  %p382_p2 = scmp.ne.s32.totalorder %s547_s3, %s381_s23  ;;  %s45_s19 = int_to_ptr.vmem [resolvable:$true] %s44_s19 }
  0x25   :  { %p385_p3 = scmp.lt.u32.totalorder %s381_s23, %s547_s3 }
  0x27   :  { %p387_p4 = pnand %p385_p3, %p382_p2 }
  0x29   :  { %390 = shalt.err (!%p387_p4)
}
  0x2a   :  { %s391_s28 = scalar_lea.vmem %s45_s19, 512  ;;  %p396_p6 = scmp.lt.s32.totalorder %s45_s19, %s45_s19 }
  0x2b   :  { %p392_p5 = scmp.ne.s32.totalorder %s45_s19, %s391_s28  ;;  %p397_p7 = scmp.lt.s32.totalorder %s391_s28, %s391_s28 }
  0x2d   :  { %p398_p8 = por %p397_p7, %p396_p6 }
  0x2f   :  { %p399_p9 = pnand %p398_p8, %p392_p5 }
  0x31   :  { %402 = shalt.err (!%p399_p9)
}
  0x32   :  { %50 = dma.hbm_to_vmem [thread:$0]  %s547_s3, 512, %s45_s19, [#allocation6], %s433_s30, %s433_s30, %s434_s6  }
  0x33   :  { %425 = dma.done.wait [#allocation3], 256  }
  0x34   :  { %426 = vsyncadd [#allocation3], 4294967040 }
  0x35   :  { %427 = dma.done.wait [#allocation6], 1024  }
  0x36   :  { %428 = vsyncadd [#allocation6], 4294966272  ;;  %vm75_vm0 = vcmask 261120   ;;  %v64_v0 = vld [vmem:[#allocation5] sm:$0xff]  ;;  %v65_v1 = vld [vmem:[#allocation5 + $0x8] sm:$0xff]  ;;  %s436_s9 = smov [#allocation8]  }
  0x37   :  { %v66_v2 = vld [vmem:[#allocation5 + $0x10] sm:$0xff]  ;;  %v311_v3 = vpack.c.bf16 %v65_v1, %v64_v0  ;;  %v67_v4 = vld [vmem:[#allocation5 + $0x18] sm:$0xff]  ;;  %v159_v8 = vld [vmem:[#allocation7] sm:$0xff]  ;;  %s258_s10 = sshll.u32 %s436_s9, 4  ;;  %s259_s10 = int_to_ptr.vmem [resolvable:$true] %s258_s10 }
  0x38   :  { %v62_v5 = vld [vmem:[#allocation2] sm:$0xff]  ;;  %v315_v6 = vpack.c.bf16 %v67_v4, %v66_v2  ;;  %v63_v7 = vld [vmem:[#allocation2 + $0x8] sm:$0xff]  ;;  %v160_v9 = vld [vmem:[#allocation7 + $0x8] sm:$0xff]  ;;  %p408_p11 = scmp.lt.s32.totalorder %s259_s10, %s259_s10 }
  0x39   :  { %297 = vmatprep.mubr.msk.f32.mxu0 %vm75_vm0, %v62_v5  ;;  %312 = vmatprep.subr.bf16.mxu0 %v311_v3  ;;  %v161_v10 = vld [vmem:[#allocation7 + $0x10] sm:$0xff]  ;;  %v319_v11 = vpack.c.bf16 %v160_v9, %v159_v8  ;;  %v162_v12 = vld [vmem:[#allocation7 + $0x18] sm:$0xff] }
  0x3a   :  { %314 = vmatpush3.bf16.msra.mxu0 %v311_v3  ;;  %v323_v13 = vpack.c.bf16 %v162_v12, %v161_v10  ;;  %v271_v14 = vld [vmem:[%s546_s2] ss:$0 sm:$0xff]  ;;  %s403_s2 = scalar_lea.vmem %s259_s10, 256 }
  0x3b   :  { %316 = vmatprep.subr.bf16.mxu0 %v315_v6  ;;  %320 = vmatprep.subr.bf16.mxu1 %v319_v11  ;;  %v274_v21 = vld [vmem:[%s548_s4] ss:$0 sm:$0xff]  ;;  %p404_p10 = scmp.ne.s32.totalorder %s259_s10, %s403_s2  ;;  %p409_p12 = scmp.lt.s32.totalorder %s403_s2, %s403_s2 }
  0x3c   :  { %322 = vmatpush3.bf16.msra.mxu1 %v319_v11 }
  0x3d   :  { %324 = vmatprep.subr.bf16.mxu1 %v323_v13  ;;  %p410_p13 = por %p409_p12, %p408_p11 }
  0x3e   :  { %318 = vmatpush3.bf16.msra.mxu0 %v315_v6 }
  0x3f   :  { %p411_p0 = pnand %p410_p13, %p404_p10 }
  0x40   :  { %326 = vmatpush3.bf16.msra.mxu1 %v323_v13 }
  0x41   :  { %298 = vmatmul.mubr.msk.f32.vlgmr.msra.gmra.mrb[0].mxu0 %vm75_vm0, %v63_v7 }
 0x114   :  { %v299_v15 = vpop.f32.mrb[0].mxu0 }
 0x115   :  { %v154_v16 = vadd.f32 %v299_v15, %v271_v14  ;;  %v148_v17 = vpop.f32.mrb[1].mxu0 }
 0x116   :  { %v149_v18 = vadd.f32 %v271_v14, %v148_v17 }
 0x118   :  { %333 = vtanh.f32 %v149_v18 }
 0x119   :  { %335 = vtanh.f32 %v154_v16 }
 0x122   :  { %v334_v19 = vpop.eup %333 }
 0x123   :  { %v336_v20 = vpop.eup %335  ;;  %308 = vmatprep.mubr.msk.f32.mxu1 %vm75_vm0, %v334_v19 }
 0x124   :  { %309 = vmatmul.mubr.msk.f32.vlgmr.msra.gmra.mrb[0].mxu1 %vm75_vm0, %v336_v20 }
 0x1f7   :  { %v310_v22 = vpop.f32.mrb[0].mxu1 }
 0x1f8   :  { %v248_v23 = vadd.f32 %v310_v22, %v274_v21  ;;  %v242_v24 = vpop.f32.mrb[1].mxu1 }
 0x1f9   :  { %v243_v25 = vadd.f32 %v274_v21, %v242_v24 }
 0x1fa   :  { %252 = vst [vmem:[#allocation8 + $0x8] sm:$0xff] %v248_v23 }
 0x1fb   :  { %251 = vst [vmem:[#allocation8] sm:$0xff] %v243_v25 }
 0x1fc   :  { %414 = shalt.err (!%p411_p0)
}
 0x1fd   :  { %s415_s4 = scalar_lea.hbm %s549_s5, 256 }
 0x1fe   :  { %p416_p1 = scmp.ne.s32.totalorder %s549_s5, %s415_s4  ;;  %p419_p2 = scmp.lt.u32.totalorder %s415_s4, %s549_s5 }
 0x200   :  { %p421_p3 = pnand %p419_p2, %p416_p1 }
 0x202   :  { %424 = shalt.err (!%p421_p3)
}
 0x203   :  { %264 = dma.vmem_to_hbm [thread:$0]  %s259_s10, 256, %s549_s5, [#allocation4], %s433_s30, %s433_s30, %s434_s6  }
 0x204   :  { %429 = dma.done.wait [#allocation4], 256  }
 0x205   :  { %430 = vsyncadd [#allocation4], 4294967040 }
 0x206   :  { %268 = vsyncpa [#allocation3], 1 }
 0x207   :  { %269 = vsyncpa [#allocation6], 1 }
 0x208   :  { %270 = vsyncpa [#allocation4], 1 }

</bundles_post_ra>
